<compile_context>
chip_gen: v6e
topology: v6e:2x2x1
jax: 0.10.0
libtpu: 0.0.40
codegen_flags: <defaults>
</compile_context>

<pallas_src>
import jax
import jax.numpy as jnp
from jax import lax
from jax.experimental import pallas as pl
from jax.experimental.pallas import tpu as pltpu

# Large negative *finite* sentinel: exp(_NEG_BIG - m) underflows to exactly 0
# in f32 and _NEG_BIG * 0 == 0 (whereas -inf * 0 would give NaN in the numerator).
_NEG_BIG = -3.0e38


def _make_kernel(nf_total: int, tn: int):
    """Kernel body with trace-time knowledge of the (folded) N extent and tile."""
    needs_mask = (nf_total % tn) != 0

    def kernel(x_ref, m_ref, num_ref, den_ref):
        # x_ref: (tb, tn, td) input tile (VMEM)
        # m_ref / num_ref / den_ref: (tb, td) f32 outputs, resident across the
        # N grid axis -> they ARE the online-softmax accumulators.
        k = pl.program_id(2)

        @pl.when(k == 0)
        def _():
            m_ref[...] = jnp.full(m_ref.shape, -jnp.inf, dtype=m_ref.dtype)
            num_ref[...] = jnp.zeros(num_ref.shape, dtype=num_ref.dtype)
            den_ref[...] = jnp.zeros(den_ref.shape, dtype=den_ref.dtype)

        x = x_ref[...].astype(jnp.float32)  # (tb, tn, td)

        if needs_mask:
            # Only traced when the last N tile is partial. A single select with
            # a (1, tn, 1) mask pushes garbage rows to a huge negative finite
            # value so they contribute exactly 0 to num/den and never win the
            # running max (and cannot inject NaN/inf from out-of-bounds data).
            row = k * tn + lax.broadcasted_iota(jnp.int32, (1, tn, 1), 1)
            x = jnp.where(row < nf_total, x, _NEG_BIG)

        m_old = m_ref[...]                                  # (tb, td)
        m_new = jnp.maximum(m_old, jnp.max(x, axis=1))      # (tb, td)
        alpha = jnp.exp(m_old - m_new)                      # rescale old acc
        p = jnp.exp(x - m_new[:, None, :])                  # (tb, tn, td)

        num_ref[...] = alpha * num_ref[...] + jnp.sum(x * p, axis=1)
        den_ref[...] = alpha * den_ref[...] + jnp.sum(p, axis=1)
        m_ref[...] = m_new

    return kernel


def _vmem_limit_bytes() -> int:
    cap = 64 << 20  # conservative fallback: v7x per-TensorCore VMEM
    try:
        cap = int(pltpu.get_tpu_info().vmem_capacity_bytes)
    except Exception:
        pass
    # Leave headroom for compiler-internal scratch; never request > ~100 MiB.
    return min(int(cap * 0.80), 100 << 20)


def exp_softmax_pool(x, *, tn_cap: int = 2048, td_target: int = 1024):
    """Pallas implementation of sum(x*exp(x), dim=1) / sum(exp(x), dim=1)."""
    B, N, D = x.shape
    orig_dtype = x.dtype

    # --- lane densification for small D: fold g instances into the lane axis ---
    g = 1
    if D < 128 and (128 % D == 0) and (N % (128 // D) == 0):
        g = 128 // D
    # TODO(synk): when D is neither a multiple of 128 nor foldable, pad D in the
    # wrapper so output stores are lane-dense (avoids masked vst.msk).
    xf = x.reshape(B, N // g, g * D) if g > 1 else x
    Nf, Df = N // g, g * D

    # --- tile sizes (per-generation VMEM budget) ---
    tb = B if B <= 8 else 8                      # second-to-last dim of output block
    td = Df if Df <= td_target else 512          # 512 is a multiple of 128
    n_b_blocks = pl.cdiv(B, tb)
    # Give v7x's second TensorCore work when the batch axis has a single block.
    if n_b_blocks == 1 and td == Df and Df >= 256 and Df % 256 == 0:
        td = Df // 2

    esize = jnp.dtype(x.dtype).itemsize
    vmem_limit = _vmem_limit_bytes()
    block_budget = (vmem_limit * 3) // 4
    # Footprint: 2 * tb*tn*td*esize (double-buffered input)
    #          + 3 * 2 * tb*td*4   (three f32 output accumulators, double-buffered)
    out_bytes = 6 * tb * td * 4
    tn_max = max(8, (block_budget - out_bytes) // (2 * tb * td * esize))
    tn = min(Nf, tn_cap, int(tn_max))
    if tn < Nf:
        tn = (tn // 8) * 8                       # sublane alignment
        if tn >= 16:
            tn = (tn // 16) * 16                 # bf16 sublane packing

    grid = (n_b_blocks, pl.cdiv(Df, td), pl.cdiv(Nf, tn))
    kernel = _make_kernel(Nf, tn)

    m, num, den = pl.pallas_call(
        kernel,
        out_shape=(
            jax.ShapeDtypeStruct((B, Df), jnp.float32),
            jax.ShapeDtypeStruct((B, Df), jnp.float32),
            jax.ShapeDtypeStruct((B, Df), jnp.float32),
        ),
        grid_spec=pltpu.PrefetchScalarGridSpec(
            num_scalar_prefetch=0,
            grid=grid,
            in_specs=[pl.BlockSpec((tb, tn, td), lambda i, j, k: (i, k, j))],
            # Output block index is constant along k -> stays resident in VMEM
            # across the reduction (accumulator pattern).
            out_specs=(
                pl.BlockSpec((tb, td), lambda i, j, k: (i, j)),
                pl.BlockSpec((tb, td), lambda i, j, k: (i, j)),
                pl.BlockSpec((tb, td), lambda i, j, k: (i, j)),
            ),
        ),
        compiler_params=pltpu.CompilerParams(
            # Batch and feature axes can be split across TensorCores; the
            # reduction axis (N) is last and sequential.
            dimension_semantics=("parallel", "parallel", "arbitrary"),
            vmem_limit_bytes=vmem_limit,
        ),
    )(xf)

    # --- tiny JAX epilogue: merge the g lane-groups (log-sum-exp) and divide ---
    if g > 1:
        m = m.reshape(B, g, D)
        num = num.reshape(B, g, D)
        den = den.reshape(B, g, D)
        m_all = jnp.max(m, axis=1)                      # (B, D)
        s = jnp.exp(m - m_all[:, None, :])              # (B, g, D)
        num = jnp.sum(num * s, axis=1)
        den = jnp.sum(den * s, axis=1)
    return (num / den).astype(orig_dtype)


if __name__ == "__main__":
    key = jax.random.PRNGKey(0)

    # Primary MIL-style shapes: batch=2, instances=8, features=32 (lane-folded path).
    B, N, D = 2, 8, 32
    x = jax.random.normal(key, (B, N, D), dtype=jnp.float32)
    out = jax.block_until_ready(exp_softmax_pool(x))
    ref = jnp.sum(x * jnp.exp(x), axis=1) / jnp.sum(jnp.exp(x), axis=1)
    assert out.shape == ref.shape, (out.shape, ref.shape)
    assert jnp.allclose(out, ref, atol=1e-5, rtol=1e-5), "mismatch vs reference (folded path)"

    # Secondary shape exercising the tiled/masked N path (N not a multiple of tn).
    B2, N2, D2 = 4, 40, 160
    x2 = jax.random.normal(jax.random.PRNGKey(1), (B2, N2, D2), dtype=jnp.float32)
    out2 = jax.block_until_ready(exp_softmax_pool(x2, tn_cap=16))
    ref2 = jnp.sum(x2 * jnp.exp(x2), axis=1) / jnp.sum(jnp.exp(x2), axis=1)
    assert out2.shape == ref2.shape, (out2.shape, ref2.shape)
    assert jnp.allclose(out2, ref2, atol=1e-5, rtol=1e-5), "mismatch vs reference (masked path)"

    print("KERNEL_OK")
</pallas_src>

<mosaic_0001>
module attributes {stable_mosaic.version = 11 : i64} {
  func.func @kernel(%arg0: i32, %arg1: i32, %arg2: i32, %arg3: memref<2x2x128xf32, #tpu.memory_space<vmem>>, %arg4: memref<2x128xf32, #tpu.memory_space<vmem>>, %arg5: memref<2x128xf32, #tpu.memory_space<vmem>>, %arg6: memref<2x128xf32, #tpu.memory_space<vmem>>) attributes {dimension_semantics = [#tpu.dimension_semantics<parallel>, #tpu.dimension_semantics<parallel>, #tpu.dimension_semantics<arbitrary>], iteration_bounds = array<i64: 1, 1, 1>, scalar_prefetch = 0 : i64, scratch_operands = 0 : i64, tpu.core_type = #tpu.core_type<tc>, window_params = [{transform_indices = @transform_0, window_bounds = array<i64: 2, 2, 128>}, {transform_indices = @transform_1, window_bounds = array<i64: 2, 128>}, {transform_indices = @transform_2, window_bounds = array<i64: 2, 128>}, {transform_indices = @transform_3, window_bounds = array<i64: 2, 128>}]} {
    %c0_i32 = arith.constant 0 : i32
    %0 = arith.cmpi eq, %arg2, %c0_i32 : i32
    %1 = arith.extui %0 : i1 to i32
    %c0_i32_0 = arith.constant 0 : i32
    %2 = arith.cmpi ne, %1, %c0_i32_0 : i32
    scf.if %2 {
      %cst_17 = arith.constant 0xFF800000 : f32
      %25 = vector.broadcast %cst_17 : f32 to vector<2x128xf32>
      %c0_18 = arith.constant 0 : index
      %c0_19 = arith.constant 0 : index
      %26 = vector.load %arg4[%c0_18, %c0_19] : memref<2x128xf32, #tpu.memory_space<vmem>>, vector<2x128xf32>
      tpu.vector_store %arg4[%c0_18, %c0_19], %25 {strides = array<i32>} : memref<2x128xf32, #tpu.memory_space<vmem>>, vector<2x128xf32>,
      %cst_20 = arith.constant 0.000000e+00 : f32
      %27 = vector.broadcast %cst_20 : f32 to vector<2x128xf32>
      %c0_21 = arith.constant 0 : index
      %c0_22 = arith.constant 0 : index
      %28 = vector.load %arg5[%c0_21, %c0_22] : memref<2x128xf32, #tpu.memory_space<vmem>>, vector<2x128xf32>
      tpu.vector_store %arg5[%c0_21, %c0_22], %27 {strides = array<i32>} : memref<2x128xf32, #tpu.memory_space<vmem>>, vector<2x128xf32>,
      %cst_23 = arith.constant 0.000000e+00 : f32
      %29 = vector.broadcast %cst_23 : f32 to vector<2x128xf32>
      %c0_24 = arith.constant 0 : index
      %c0_25 = arith.constant 0 : index
      %30 = vector.load %arg6[%c0_24, %c0_25] : memref<2x128xf32, #tpu.memory_space<vmem>>, vector<2x128xf32>
      tpu.vector_store %arg6[%c0_24, %c0_25], %29 {strides = array<i32>} : memref<2x128xf32, #tpu.memory_space<vmem>>, vector<2x128xf32>,
    } else {
    }
    %c0 = arith.constant 0 : index
    %c0_1 = arith.constant 0 : index
    %c0_2 = arith.constant 0 : index
    %3 = vector.load %arg3[%c0, %c0_1, %c0_2] : memref<2x2x128xf32, #tpu.memory_space<vmem>>, vector<2x2x128xf32>
    %c0_3 = arith.constant 0 : index
    %c0_4 = arith.constant 0 : index
    %4 = vector.load %arg4[%c0_3, %c0_4] : memref<2x128xf32, #tpu.memory_space<vmem>>, vector<2x128xf32>
    %cst = arith.constant dense<0xFF800000> : vector<2x128xf32>
    %5 = vector.multi_reduction <maximumf>, %3, %cst [1] : vector<2x2x128xf32> to vector<2x128xf32>
    %6 = arith.maximumf %4, %5 : vector<2x128xf32>
    %7 = arith.subf %4, %6 : vector<2x128xf32>
    %8 = math.exp %7 : vector<2x128xf32>
    %9 = vector.shape_cast %6 : vector<2x128xf32> to vector<2x1x128xf32>
    %10 = vector.broadcast %9 : vector<2x1x128xf32> to vector<2x2x128xf32>
    %11 = arith.subf %3, %10 : vector<2x2x128xf32>
    %12 = math.exp %11 : vector<2x2x128xf32>
    %c0_5 = arith.constant 0 : index
    %c0_6 = arith.constant 0 : index
    %13 = vector.load %arg5[%c0_5, %c0_6] : memref<2x128xf32, #tpu.memory_space<vmem>>, vector<2x128xf32>
    %14 = arith.mulf %8, %13 : vector<2x128xf32>
    %15 = arith.mulf %3, %12 : vector<2x2x128xf32>
    %cst_7 = arith.constant dense<0.000000e+00> : vector<2x128xf32>
    %16 = vector.multi_reduction <add>, %15, %cst_7 [1] : vector<2x2x128xf32> to vector<2x128xf32>
    %17 = arith.addf %14, %16 : vector<2x128xf32>
    %c0_8 = arith.constant 0 : index
    %c0_9 = arith.constant 0 : index
    %18 = vector.load %arg5[%c0_8, %c0_9] : memref<2x128xf32, #tpu.memory_space<vmem>>, vector<2x128xf32>
    tpu.vector_store %arg5[%c0_8, %c0_9], %17 {strides = array<i32>} : memref<2x128xf32, #tpu.memory_space<vmem>>, vector<2x128xf32>,
    %c0_10 = arith.constant 0 : index
    %c0_11 = arith.constant 0 : index
    %19 = vector.load %arg6[%c0_10, %c0_11] : memref<2x128xf32, #tpu.memory_space<vmem>>, vector<2x128xf32>
    %20 = arith.mulf %8, %19 : vector<2x128xf32>
    %cst_12 = arith.constant dense<0.000000e+00> : vector<2x128xf32>
    %21 = vector.multi_reduction <add>, %12, %cst_12 [1] : vector<2x2x128xf32> to vector<2x128xf32>
    %22 = arith.addf %20, %21 : vector<2x128xf32>
    %c0_13 = arith.constant 0 : index
    %c0_14 = arith.constant 0 : index
    %23 = vector.load %arg6[%c0_13, %c0_14] : memref<2x128xf32, #tpu.memory_space<vmem>>, vector<2x128xf32>
    tpu.vector_store %arg6[%c0_13, %c0_14], %22 {strides = array<i32>} : memref<2x128xf32, #tpu.memory_space<vmem>>, vector<2x128xf32>,
    %c0_15 = arith.constant 0 : index
    %c0_16 = arith.constant 0 : index
    %24 = vector.load %arg4[%c0_15, %c0_16] : memref<2x128xf32, #tpu.memory_space<vmem>>, vector<2x128xf32>
    tpu.vector_store %arg4[%c0_15, %c0_16], %6 {strides = array<i32>} : memref<2x128xf32, #tpu.memory_space<vmem>>, vector<2x128xf32>,
    return
  }
  func.func @transform_0(%arg0: i32, %arg1: i32, %arg2: i32) -> (i32, i32, i32) {
    %c0_i32 = arith.constant 0 : i32
    return %arg0, %arg2, %arg1 : i32, i32, i32
  }
  func.func @transform_1(%arg0: i32, %arg1: i32, %arg2: i32) -> (i32, i32) {
    %c0_i32 = arith.constant 0 : i32
    return %arg0, %arg1 : i32, i32
  }
  func.func @transform_2(%arg0: i32, %arg1: i32, %arg2: i32) -> (i32, i32) {
    %c0_i32 = arith.constant 0 : i32
    return %arg0, %arg1 : i32, i32
  }
  func.func @transform_3(%arg0: i32, %arg1: i32, %arg2: i32) -> (i32, i32) {
    %c0_i32 = arith.constant 0 : i32
    return %arg0, %arg1 : i32, i32
  }
}

</mosaic_0001>

<bundles_post_ra>
// kernel: tpu_custom_call.1
= control target key start
LH: loop header
LB: loop body
LE: loop exit
PB: predicated region body
PF: predicated region fallthrough
CT: control target
= control target key end

     0   :  { %9 = vsyncpa [#allocation3], 0  ;;  %s340_s0 = inlined_call_operand.hbm [shape: f32[2,2,128], index: 0, kind: input, shape index: {}]   ;;  %s341_s1 = inlined_call_operand.hbm [shape: f32[2,128], index: 1, kind: output, shape index: {0}]   ;;  %s342_s2 = inlined_call_operand.hbm [shape: f32[2,128], index: 2, kind: output, shape index: {1}]   ;;  %s343_s3 = inlined_call_operand.hbm [shape: f32[2,128], index: 3, kind: output, shape index: {2}]  }
   0x1   :  { %10 = vsyncpa [#allocation4], 0 }
   0x2   :  { %11 = vsyncpa [#allocation7], 0  ;;  %s290_s12 = smov [#allocation2]  }
   0x3   :  { %s17_s13 = sshll.u32 %s290_s12, 4  ;;  %s18_s13 = int_to_ptr.vmem [resolvable:$true] %s17_s13 }
   0x4   :  { %s212_s14 = scalar_lea.vmem %s18_s13, 64  ;;  %p217_p1 = scmp.lt.s32.totalorder %s18_s13, %s18_s13 }
   0x5   :  { %p213_p0 = scmp.ne.s32.totalorder %s18_s13, %s212_s14  ;;  %p218_p2 = scmp.lt.s32.totalorder %s212_s14, %s212_s14 }
   0x7   :  { %p219_p3 = por %p218_p2, %p217_p1 }
   0x9   :  { %p220_p4 = pnand %p219_p3, %p213_p0 }
   0xb   :  { %223 = shalt.err (!%p220_p4)
}
   0xc   :  { %s291_s15 = smov 32   ;;  %s292_s16 = smov 2  }
   0xd   :  { %23 = dma.hbm_to_vmem [thread:$0]  %s340_s0, 64, %s18_s13, [#allocation3], %s291_s15, %s291_s15, %s292_s16  }
   0xe   :  { %284 = dma.done.wait [#allocation3], 64  }
   0xf   :  { %285 = vsyncadd [#allocation3], 4294967232  ;;  %v293_v0 = vmov -inf   ;;  %v294_v1 = vmov 0.0   ;;  %vm37_vm0 = vcmask 1041408   ;;  %v65_v12 = vlaneseq  ;;  %s296_s0 = smov [#allocation5]  }
  0x10   :  { %31 = vst [vmem:[#allocation5] sm:$0x3] %v293_v0  ;;  %32 = vst [vmem:[#allocation6] sm:$0x3] %v294_v1  ;;  %v34_v2 = vld [vmem:[#allocation2] sm:$0x3] }
  0x11   :  { %33 = vst [vmem:[#allocation8] sm:$0x3] %v294_v1  ;;  %v35_v3 = vld [vmem:[#allocation2 + $0x2] sm:$0x3]  ;;  %v38_v4 = vsel %vm37_vm0, %v34_v2, -inf  ;;  %v66_v18 = vshrl.u32 %v65_v12, 7 }
  0x12   :  { %v45_v5 = vsel %vm37_vm0, %v35_v3, -inf  ;;  %v39_v6 = vrot.slane %v38_v4, 4  ;;  %v295_v10 = vmov 1966171168   ;;  %vm54_vm1 = vcmask 1041409   ;;  %s153_s19 = sshll.u32 %s296_s0, 4  ;;  %s154_s19 = int_to_ptr.vmem [resolvable:$true] %s153_s19 }
  0x13   :  { %v46_v7 = vrot.slane %v45_v5, 4  ;;  %v63_v11 = vunpack.c.l.s4 %v295_v10  ;;  %v86_v28 = vsub.s32 0, %v66_v18  ;;  %s224_s20 = scalar_lea.vmem %s154_s19, 32  ;;  %p229_p6 = scmp.lt.s32.totalorder %s154_s19, %s154_s19 }
  0x14   :  { %v40_v8 = vmax.f32 %v38_v4, %v39_v6  ;;  %p225_p5 = scmp.ne.s32.totalorder %s154_s19, %s224_s20  ;;  %p230_p7 = scmp.lt.s32.totalorder %s224_s20, %s224_s20 }
  0x15   :  { %v47_v9 = vmax.f32 %v45_v5, %v46_v7  ;;  %v64_v17 = vunpack.c.0.s8 %v63_v11 }
  0x16   :  { %v41_v13 = vrot.slane %v40_v8, 2  ;;  %p231_p8 = por %p230_p7, %p229_p6 }
  0x17   :  { %v48_v14 = vrot.slane %v47_v9, 2  ;;  %v36_v21 = vld [vmem:[#allocation5] sm:$0x3]  ;;  %v67_v24 = vsub.s32 %v64_v17, %v66_v18 }
  0x18   :  { %v42_v15 = vmax.f32 %v40_v8, %v41_v13  ;;  %p232_p9 = pnand %p231_p8, %p225_p5 }
  0x19   :  { %v49_v16 = vmax.f32 %v47_v9, %v48_v14 }
  0x1a   :  { %v43_v19 = vrot.slane %v42_v15, 1 }
  0x1b   :  { %v50_v20 = vrot.slane %v49_v16, 1 }
  0x1c   :  { %v44_v22 = vmax.f32 %v42_v15, %v43_v19 }
  0x1d   :  { %v51_v23 = vmax.f32 %v49_v16, %v50_v20 }
  0x1f   :  { %v55_v25 = vsel %vm54_vm1, %v51_v23, %v44_v22 }
  0x20   :  { %v57_v26 = vmax.f32 %v36_v21, %v55_v25 }
  0x22   :  { %v68_v27 = vrot.slane %v57_v26, %v67_v24  ;;  %146 = vst [vmem:[#allocation5] sm:$0x3] %v57_v26 }
  0x23   :  { %235 = shalt.err (!%p232_p9)
}
  0x24   :  { %156 = dma.vmem_to_hbm [thread:$0]  %s154_s19, 32, %s341_s1, [#allocation4]   ;;  %v69_v29 = vcombine.high %v68_v27, %v68_v27  ;;  %v76_v30 = vrot.slane %v68_v27, %v67_v24  ;;  %v58_v38 = vsub.f32 %v36_v21, %v57_v26  ;;  %v124_v1 = vld [vmem:[#allocation8] sm:$0x3]  ;;  %v100_v7 = vld [vmem:[#allocation6] sm:$0x3] }
  0x25   :  { %s297_s1 = smov [#allocation6]   ;;  %s298_s24 = smov [#allocation8]  }
  0x26   :  { %v83_v31 = vrot.slane %v69_v29, %v67_v24  ;;  %v87_v32 = vrot.slane %v76_v30, %v86_v28  ;;  %v59_v39 = vmul.f32 1.442695, %v58_v38  ;;  %s163_s23 = sshll.u32 %s297_s1, 4  ;;  %s173_s25 = sshll.u32 %s298_s24, 4  ;;  %s164_s23 = int_to_ptr.vmem [resolvable:$true] %s163_s23  ;;  %s174_s25 = int_to_ptr.vmem [resolvable:$true] %s173_s25 }
  0x27   :  { %s244_s26 = scalar_lea.vmem %s164_s23, 32  ;;  %p249_p11 = scmp.lt.s32.totalorder %s164_s23, %s164_s23 }
  0x28   :  { %v91_v33 = vrot.slane %v83_v31, %v86_v28  ;;  %v94_v34 = vsub.f32 %v34_v2, %v87_v32  ;;  %p245_p10 = scmp.ne.s32.totalorder %s164_s23, %s244_s26  ;;  %p250_p12 = scmp.lt.s32.totalorder %s244_s26, %s244_s26 }
  0x2a   :  { %v95_v35 = vsub.f32 %v35_v3, %v91_v33  ;;  %v96_v36 = vmul.f32 1.442695, %v94_v34  ;;  %p251_p13 = por %p250_p12, %p249_p11 }
  0x2c   :  { %198 = vpow2.f32 %v96_v36  ;;  %v98_v37 = vmul.f32 1.442695, %v95_v35  ;;  %p252_p0 = pnand %p251_p13, %p245_p10 }
  0x2e   :  { %200 = vpow2.f32 %v98_v37 }
  0x2f   :  { %202 = vpow2.f32 %v59_v39 }
  0x39   :  { %v199_v40 = vpop.eup %198 }
  0x3a   :  { %v126_v41 = vsel %vm37_vm0, %v199_v40, 0.0  ;;  %v102_v42 = vmul.f32 %v199_v40, %v34_v2 }
  0x3b   :  { %v201_v43 = vpop.eup %200  ;;  %v127_v44 = vrot.slane %v126_v41, 4 }
  0x3c   :  { %v133_v45 = vsel %vm37_vm0, %v201_v43, 0.0  ;;  %v103_v46 = vmul.f32 %v201_v43, %v35_v3  ;;  %v104_v47 = vsel %vm37_vm0, %v102_v42, 0.0  ;;  %v203_v0 = vpop.eup %202 }
  0x3d   :  { %v128_v48 = vadd.f32 %v127_v44, %v126_v41  ;;  %v134_v49 = vrot.slane %v133_v45, 4  ;;  %v105_v50 = vrot.slane %v104_v47, 4  ;;  %v125_v9 = vmul.f32 %v203_v0, %v124_v1 }
  0x3e   :  { %v111_v51 = vsel %vm37_vm0, %v103_v46, 0.0  ;;  %v101_v14 = vmul.f32 %v203_v0, %v100_v7 }
  0x3f   :  { %v129_v52 = vrot.slane %v128_v48, 2  ;;  %v135_v53 = vadd.f32 %v134_v49, %v133_v45  ;;  %v106_v54 = vadd.f32 %v105_v50, %v104_v47  ;;  %v112_v55 = vrot.slane %v111_v51, 4 }
  0x41   :  { %v130_v56 = vadd.f32 %v129_v52, %v128_v48  ;;  %v136_v57 = vrot.slane %v135_v53, 2  ;;  %v107_v58 = vrot.slane %v106_v54, 2  ;;  %v113_v59 = vadd.f32 %v112_v55, %v111_v51 }
  0x43   :  { %v131_v60 = vrot.slane %v130_v56, 1  ;;  %v137_v61 = vadd.f32 %v136_v57, %v135_v53  ;;  %v108_v62 = vadd.f32 %v107_v58, %v106_v54  ;;  %v114_v63 = vrot.slane %v113_v59, 2 }
  0x45   :  { %v138_v2 = vrot.slane %v137_v61, 1  ;;  %v109_v3 = vrot.slane %v108_v62, 1  ;;  %v115_v4 = vadd.f32 %v114_v63, %v113_v59  ;;  %v132_v5 = vadd.f32 %v131_v60, %v130_v56 }
  0x47   :  { %v139_v6 = vadd.f32 %v138_v2, %v137_v61  ;;  %v116_v8 = vrot.slane %v115_v4, 1  ;;  %v110_v11 = vadd.f32 %v109_v3, %v108_v62 }
  0x49   :  { %v142_v10 = vsel %vm54_vm1, %v139_v6, %v132_v5  ;;  %v117_v12 = vadd.f32 %v116_v8, %v115_v4 }
  0x4a   :  { %v144_v13 = vadd.f32 %v142_v10, %v125_v9 }
  0x4b   :  { %v120_v15 = vsel %vm54_vm1, %v117_v12, %v110_v11 }
  0x4c   :  { %145 = vst [vmem:[#allocation8] sm:$0x3] %v144_v13  ;;  %v122_v16 = vadd.f32 %v120_v15, %v101_v14 }
  0x4e   :  { %123 = vst [vmem:[#allocation6] sm:$0x3] %v122_v16 }
  0x4f   :  { %255 = shalt.err (!%p252_p0)
}
  0x50   :  { %166 = dma.vmem_to_hbm [thread:$0]  %s164_s23, 32, %s342_s2, [#allocation7]  }
  0x51   :  { %s264_s29 = scalar_lea.vmem %s174_s25, 32  ;;  %p269_p2 = scmp.lt.s32.totalorder %s174_s25, %s174_s25 }
  0x52   :  { %p265_p1 = scmp.ne.s32.totalorder %s174_s25, %s264_s29  ;;  %p270_p3 = scmp.lt.s32.totalorder %s264_s29, %s264_s29 }
  0x54   :  { %p271_p4 = por %p270_p3, %p269_p2 }
  0x56   :  { %p272_p5 = pnand %p271_p4, %p265_p1 }
  0x58   :  { %275 = shalt.err (!%p272_p5)
}
  0x59   :  { %176 = dma.vmem_to_hbm [thread:$0]  %s174_s25, 32, %s343_s3, [#allocation7]  }
  0x5a   :  { %286 = dma.done.wait [#allocation4], 32  }
  0x5b   :  { %287 = vsyncadd [#allocation4], 4294967264 }
  0x5c   :  { %288 = dma.done.wait [#allocation7], 64  }
  0x5d   :  { %289 = vsyncadd [#allocation7], 4294967232 }
  0x5e   :  { %186 = vsyncpa [#allocation3], 1 }
  0x5f   :  { %187 = vsyncpa [#allocation4], 1 }
  0x60   :  { %188 = vsyncpa [#allocation7], 1 }

</bundles_post_ra>
